<compile_context>
chip_gen: v5e
topology: v5e:2x2
jax: 0.10.0
libtpu: 0.0.40
codegen_flags: <defaults>
</compile_context>

<pallas_src>
import functools

import jax
import jax.numpy as jnp
from jax.experimental import pallas as pl
from jax.experimental.pallas import tpu as pltpu

B_TILE = 8   # sentences per grid step == one sublane tile


def _lstm_tagger_kernel(S, B, H, T,
                        emb_ref,     # (1, S*B, E)  VMEM
                        wih_ref,     # (E, 4H)      VMEM (resident across grid)
                        whh_ref,     # (H, 4H)      VMEM (resident across grid)
                        b_ref,       # (1, 4H)      VMEM
                        wtag_ref,    # (H, T)       VMEM
                        btag_ref,    # (1, T)       VMEM
                        out_ref,     # (1, S*B, T)  VMEM
                        hs_ref):     # VMEM scratch (S*B, H): per-step hidden states
    emb = emb_ref[0, :, :]                                          # (S*B, E)

    # --- 1) Input projection for all (sentence, step) pairs at once: one MXU
    #        matmul with M = S*B, off the serial critical path.  Kept as a plain
    #        value (no VMEM scratch round-trip). ------------------------------
    gx = (jnp.dot(emb, wih_ref[...], preferred_element_type=jnp.float32)
          + b_ref[...])                                             # (S*B, 4H)

    whh = whh_ref[...]                                              # (H, 4H), hoisted

    # --- 2) Serial LSTM recurrence over S steps, B sentences in parallel along
    #        the sublane axis.  Zero-initialized h/c (== init_hidden). ---------
    h = jnp.zeros((B, H), jnp.float32)
    c = jnp.zeros((B, H), jnp.float32)
    for t in range(S):                                              # static unroll
        gates = gx[t * B:(t + 1) * B, :] + jnp.dot(
            h, whh, preferred_element_type=jnp.float32)             # (B, 4H)

        # One whole-vreg sigmoid covers all four gates (4H == 128 lanes).
        sig = jax.nn.sigmoid(gates)
        i_g = sig[:, 0 * H:1 * H]
        f_g = sig[:, 1 * H:2 * H]
        # tanh(z) == 2*sigmoid(2z) - 1; the 2x is folded into the g columns of
        # W_ih^T / W_hh^T / b in the wrapper, so only a VALU mul/add remains here.
        g_g = 2.0 * sig[:, 2 * H:3 * H] - 1.0
        o_g = sig[:, 3 * H:4 * H]

        c = f_g * c + i_g * g_g
        h = o_g * jnp.tanh(c)

        hs_ref[t * B:(t + 1) * B, :] = h                            # (B,H) tile store

    # --- 3) Batched tag head + log_softmax, one dense (S*B, T) output write. --
    tag = (jnp.dot(hs_ref[...], wtag_ref[...],
                   preferred_element_type=jnp.float32)
           + btag_ref[...])                                         # (S*B, T)
    m = jnp.max(tag, axis=-1, keepdims=True)
    lse = m + jnp.log(jnp.sum(jnp.exp(tag - m), axis=-1, keepdims=True))
    out_ref[0, :, :] = (tag - lse).astype(out_ref.dtype)


def lstm_tagger_forward_batched(sentences, emb_table, w_ih_t, w_hh_t, b,
                                w_tag_t, b_tag):
    """sentences: (B, S) int32 -> (B, S, T) f32 log-softmax tag scores."""
    B, S = sentences.shape
    E = emb_table.shape[1]
    H = w_hh_t.shape[0]
    T = w_tag_t.shape[1]

    # Pad the batch up to a multiple of B_TILE sentences (one sublane tile).
    pad = (-B) % B_TILE
    if pad:
        sentences = jnp.concatenate(
            [sentences, jnp.zeros((pad, S), sentences.dtype)], axis=0)
    Bp = B + pad
    nchunks = Bp // B_TILE

    # Fold the 2x g-gate prescale (tanh -> sigmoid trick) into the weights/bias.
    g_scale = jnp.ones((4 * H,), jnp.float32).at[2 * H:3 * H].set(2.0)
    w_ih_s = (w_ih_t * g_scale[None, :]).astype(jnp.float32)
    w_hh_s = (w_hh_t * g_scale[None, :]).astype(jnp.float32)
    b_s = (b * g_scale[None, :]).astype(jnp.float32)

    # Pre-gather embeddings in the wrapper (one slab, no in-kernel gather DMAs)
    # and lay them out chunk-major, step-major: (nchunks, S*B_TILE, E) so each
    # timestep is a contiguous B_TILE-row block.
    embeds = emb_table[sentences].astype(jnp.float32)               # (Bp, S, E)
    embeds = (embeds.reshape(nchunks, B_TILE, S, E)
              .transpose(0, 2, 1, 3)
              .reshape(nchunks, S * B_TILE, E))

    kernel = functools.partial(_lstm_tagger_kernel, S, B_TILE, H, T)

    out = pl.pallas_call(
        kernel,
        out_shape=jax.ShapeDtypeStruct((nchunks, S * B_TILE, T), jnp.float32),
        grid=(nchunks,),
        in_specs=[
            pl.BlockSpec((1, S * B_TILE, E), lambda i: (i, 0, 0)),
            # Weights/biases: constant index_map -> VMEM-resident across chunks.
            pl.BlockSpec((E, 4 * H), lambda i: (0, 0)),
            pl.BlockSpec((H, 4 * H), lambda i: (0, 0)),
            pl.BlockSpec((1, 4 * H), lambda i: (0, 0)),
            pl.BlockSpec((H, T), lambda i: (0, 0)),
            pl.BlockSpec((1, T), lambda i: (0, 0)),
        ],
        out_specs=pl.BlockSpec((1, S * B_TILE, T), lambda i: (i, 0, 0)),
        scratch_shapes=[
            pltpu.VMEM((S * B_TILE, H), jnp.float32),   # per-step hidden states
        ],
        compiler_params=pltpu.CompilerParams(
            dimension_semantics=("parallel",)),          # v7x: 2 TCs share chunks
    )(embeds, w_ih_s, w_hh_s, b_s, w_tag_t.astype(jnp.float32),
      b_tag.astype(jnp.float32))

    # (nchunks, S*B_TILE, T) -> (Bp, S, T), drop padding.
    out = (out.reshape(nchunks, S, B_TILE, T)
           .transpose(0, 2, 1, 3)
           .reshape(Bp, S, T))
    return out[:B]


def lstm_tagger_forward(sentence, emb_table, w_ih_t, w_hh_t, b, w_tag_t, b_tag):
    """Single-sentence interface matching LSTMTagger.forward: (S,) -> (S, T)."""
    out = lstm_tagger_forward_batched(sentence[None, :], emb_table, w_ih_t,
                                      w_hh_t, b, w_tag_t, b_tag)
    return out[0]


def lstm_tagger_reference(sentence, emb_table, w_ih_t, w_hh_t, b, w_tag_t, b_tag):
    """Pure-JAX single-sentence reference (no prescale trick) for checking."""
    H = w_hh_t.shape[0]
    embeds = emb_table[sentence]                       # (S, E)

    def step(carry, x):
        h, c = carry
        gates = x[None, :] @ w_ih_t + h @ w_hh_t + b   # (1, 4H)
        i = jax.nn.sigmoid(gates[:, 0 * H:1 * H])
        f = jax.nn.sigmoid(gates[:, 1 * H:2 * H])
        g = jnp.tanh(gates[:, 2 * H:3 * H])
        o = jax.nn.sigmoid(gates[:, 3 * H:4 * H])
        c = f * c + i * g
        h = o * jnp.tanh(c)
        return (h, c), h[0]

    h0 = jnp.zeros((1, H), jnp.float32)
    c0 = jnp.zeros((1, H), jnp.float32)
    _, hs = jax.lax.scan(step, (h0, c0), embeds)       # (S, H)
    tag_space = hs @ w_tag_t + b_tag
    return jax.nn.log_softmax(tag_space, axis=1)


if __name__ == "__main__":
    VOCAB_SIZE = 20
    EMBEDDING_DIM = 32
    HIDDEN_DIM = 32
    TARGET_SIZE = 8
    SEQ_LEN = 8
    BATCH = 16          # two B_TILE=8 chunks -> exercises the parallel grid axis

    key = jax.random.PRNGKey(0)
    k_emb, k_wih, k_whh, k_bih, k_bhh, k_wtag, k_btag, k_sent = jax.random.split(key, 8)

    bound = 1.0 / jnp.sqrt(HIDDEN_DIM)

    # nn.Embedding(vocab, emb): N(0,1)
    emb_table = jax.random.normal(k_emb, (VOCAB_SIZE, EMBEDDING_DIM), jnp.float32)

    # nn.LSTM(emb, hidden): weight_ih_l0 (4H,E), weight_hh_l0 (4H,H), biases (4H,)
    w_ih = jax.random.uniform(k_wih, (4 * HIDDEN_DIM, EMBEDDING_DIM), jnp.float32, -bound, bound)
    w_hh = jax.random.uniform(k_whh, (4 * HIDDEN_DIM, HIDDEN_DIM), jnp.float32, -bound, bound)
    b_ih = jax.random.uniform(k_bih, (4 * HIDDEN_DIM,), jnp.float32, -bound, bound)
    b_hh = jax.random.uniform(k_bhh, (4 * HIDDEN_DIM,), jnp.float32, -bound, bound)

    # nn.Linear(hidden, target): weight (T,H), bias (T,)
    w_tag = jax.random.uniform(k_wtag, (TARGET_SIZE, HIDDEN_DIM), jnp.float32, -bound, bound)
    b_tag = jax.random.uniform(k_btag, (TARGET_SIZE,), jnp.float32, -bound, bound)

    sentences = jax.random.randint(k_sent, (BATCH, SEQ_LEN), 0, VOCAB_SIZE, jnp.int32)

    # Glue: transpose weights to (in, out); fold the two LSTM biases; biases 2-D.
    w_ih_t = w_ih.T                                    # (E, 4H)
    w_hh_t = w_hh.T                                    # (H, 4H)
    b_lstm = (b_ih + b_hh)[None, :]                    # (1, 4H)
    w_tag_t = w_tag.T                                  # (H, T)
    b_tag_2d = b_tag[None, :]                          # (1, T)

    # Batched kernel call (B sentences in one pallas_call).
    out = lstm_tagger_forward_batched(sentences, emb_table, w_ih_t, w_hh_t,
                                      b_lstm, w_tag_t, b_tag_2d)
    out = jax.block_until_ready(out)
    assert out.shape == (BATCH, SEQ_LEN, TARGET_SIZE)

    ref = jnp.stack([
        lstm_tagger_reference(sentences[i], emb_table, w_ih_t, w_hh_t,
                              b_lstm, w_tag_t, b_tag_2d)
        for i in range(BATCH)
    ])
    assert jnp.allclose(out, ref, atol=1e-4, rtol=1e-4), "batched mismatch vs reference"

    # Single-sentence interface (matches LSTMTagger.forward exactly).
    out1 = lstm_tagger_forward(sentences[0], emb_table, w_ih_t, w_hh_t,
                               b_lstm, w_tag_t, b_tag_2d)
    out1 = jax.block_until_ready(out1)
    assert out1.shape == (SEQ_LEN, TARGET_SIZE)
    assert jnp.allclose(out1, ref[0], atol=1e-4, rtol=1e-4), "single mismatch vs reference"

    print("KERNEL_OK")
</pallas_src>

<mosaic_0001>
module attributes {stable_mosaic.version = 11 : i64} {
  func.func @_lstm_tagger_kernel(%arg0: i32, %arg1: memref<1x64x32xf32, #tpu.memory_space<vmem>>, %arg2: memref<32x128xf32, #tpu.memory_space<vmem>>, %arg3: memref<32x128xf32, #tpu.memory_space<vmem>>, %arg4: memref<1x128xf32, #tpu.memory_space<vmem>>, %arg5: memref<32x8xf32, #tpu.memory_space<vmem>>, %arg6: memref<1x8xf32, #tpu.memory_space<vmem>>, %arg7: memref<1x64x8xf32, #tpu.memory_space<vmem>>, %arg8: memref<64x32xf32, #tpu.memory_space<vmem>>) attributes {dimension_semantics = [#tpu.dimension_semantics<parallel>], iteration_bounds = array<i64: 2>, scalar_prefetch = 0 : i64, scratch_operands = 1 : i64, tpu.core_type = #tpu.core_type<tc>, window_params = [{transform_indices = @transform_0, window_bounds = array<i64: 1, 64, 32>}, {pipeline_mode = #tpu.pipeline_mode<synchronous>, transform_indices = @transform_1, window_bounds = array<i64: 32, 128>}, {pipeline_mode = #tpu.pipeline_mode<synchronous>, transform_indices = @transform_2, window_bounds = array<i64: 32, 128>}, {pipeline_mode = #tpu.pipeline_mode<synchronous>, transform_indices = @transform_3, window_bounds = array<i64: 1, 128>}, {pipeline_mode = #tpu.pipeline_mode<synchronous>, transform_indices = @transform_4, window_bounds = array<i64: 32, 8>}, {pipeline_mode = #tpu.pipeline_mode<synchronous>, transform_indices = @transform_5, window_bounds = array<i64: 1, 8>}, {transform_indices = @transform_6, window_bounds = array<i64: 1, 64, 8>}]} {
    %c0 = arith.constant 0 : index
    %c0_0 = arith.constant 0 : index
    %c0_1 = arith.constant 0 : index
    %0 = vector.load %arg1[%c0, %c0_0, %c0_1] : memref<1x64x32xf32, #tpu.memory_space<vmem>>, vector<1x64x32xf32>
    %1 = vector.shape_cast %0 : vector<1x64x32xf32> to vector<64x32xf32>
    %c0_2 = arith.constant 0 : index
    %c0_3 = arith.constant 0 : index
    %2 = vector.load %arg2[%c0_2, %c0_3] : memref<32x128xf32, #tpu.memory_space<vmem>>, vector<32x128xf32>
    %cst = arith.constant dense<0.000000e+00> : vector<64x128xf32>
    %3 = tpu.matmul %1, %2, %cst {dimension_numbers = #tpu.dot_dimension_numbers<[1], [0], [0], [1], [0, 0, 1, 1], [], []>} : vector<64x32xf32>, vector<32x128xf32>, vector<64x128xf32> -> vector<64x128xf32>
    %c0_4 = arith.constant 0 : index
    %c0_5 = arith.constant 0 : index
    %4 = vector.load %arg4[%c0_4, %c0_5] : memref<1x128xf32, #tpu.memory_space<vmem>>, vector<1x128xf32>
    %5 = vector.broadcast %4 : vector<1x128xf32> to vector<64x128xf32>
    %6 = arith.addf %3, %5 : vector<64x128xf32>
    %c0_6 = arith.constant 0 : index
    %c0_7 = arith.constant 0 : index
    %7 = vector.load %arg3[%c0_6, %c0_7] : memref<32x128xf32, #tpu.memory_space<vmem>>, vector<32x128xf32>
    %cst_8 = arith.constant 0.000000e+00 : f32
    %8 = vector.broadcast %cst_8 : f32 to vector<8x32xf32>
    %cst_9 = arith.constant 0.000000e+00 : f32
    %9 = vector.broadcast %cst_9 : f32 to vector<8x32xf32>
    %10 = vector.extract_strided_slice %6 {offsets = [0, 0], sizes = [8, 128], strides = [1, 1]} : vector<64x128xf32> to vector<8x128xf32>
    %cst_10 = arith.constant dense<0.000000e+00> : vector<8x128xf32>
    %11 = tpu.matmul %8, %7, %cst_10 {dimension_numbers = #tpu.dot_dimension_numbers<[1], [0], [0], [1], [0, 0, 1, 1], [], []>} : vector<8x32xf32>, vector<32x128xf32>, vector<8x128xf32> -> vector<8x128xf32>
    %12 = arith.addf %10, %11 : vector<8x128xf32>
    %13 = arith.negf %12 : vector<8x128xf32>
    %14 = math.exp %13 : vector<8x128xf32>
    %cst_11 = arith.constant 1.000000e+00 : f32
    %15 = vector.broadcast %cst_11 : f32 to vector<8x128xf32>
    %16 = arith.addf %15, %14 : vector<8x128xf32>
    %17 = arith.divf %15, %16 : vector<8x128xf32>
    %18 = vector.extract_strided_slice %17 {offsets = [0, 0], sizes = [8, 32], strides = [1, 1]} : vector<8x128xf32> to vector<8x32xf32>
    %19 = vector.extract_strided_slice %17 {offsets = [0, 32], sizes = [8, 32], strides = [1, 1]} : vector<8x128xf32> to vector<8x32xf32>
    %20 = vector.extract_strided_slice %17 {offsets = [0, 64], sizes = [8, 32], strides = [1, 1]} : vector<8x128xf32> to vector<8x32xf32>
    %cst_12 = arith.constant 2.000000e+00 : f32
    %21 = vector.broadcast %cst_12 : f32 to vector<8x32xf32>
    %22 = arith.mulf %21, %20 : vector<8x32xf32>
    %cst_13 = arith.constant 1.000000e+00 : f32
    %23 = vector.broadcast %cst_13 : f32 to vector<8x32xf32>
    %24 = arith.subf %22, %23 : vector<8x32xf32>
    %25 = vector.extract_strided_slice %17 {offsets = [0, 96], sizes = [8, 32], strides = [1, 1]} : vector<8x128xf32> to vector<8x32xf32>
    %26 = arith.mulf %19, %9 : vector<8x32xf32>
    %27 = arith.mulf %18, %24 : vector<8x32xf32>
    %28 = arith.addf %26, %27 : vector<8x32xf32>
    %29 = math.tanh %28 : vector<8x32xf32>
    %30 = arith.mulf %25, %29 : vector<8x32xf32>
    %c0_14 = arith.constant 0 : index
    %c0_15 = arith.constant 0 : index
    %31 = vector.load %arg8[%c0_14, %c0_15] : memref<64x32xf32, #tpu.memory_space<vmem>>, vector<8x32xf32>
    tpu.vector_store %arg8[%c0_14, %c0_15], %30 {strides = array<i32>} : memref<64x32xf32, #tpu.memory_space<vmem>>, vector<8x32xf32>,
    %32 = vector.extract_strided_slice %6 {offsets = [8, 0], sizes = [8, 128], strides = [1, 1]} : vector<64x128xf32> to vector<8x128xf32>
    %cst_16 = arith.constant dense<0.000000e+00> : vector<8x128xf32>
    %33 = tpu.matmul %30, %7, %cst_16 {dimension_numbers = #tpu.dot_dimension_numbers<[1], [0], [0], [1], [0, 0, 1, 1], [], []>} : vector<8x32xf32>, vector<32x128xf32>, vector<8x128xf32> -> vector<8x128xf32>
    %34 = arith.addf %32, %33 : vector<8x128xf32>
    %35 = arith.negf %34 : vector<8x128xf32>
    %36 = math.exp %35 : vector<8x128xf32>
    %cst_17 = arith.constant 1.000000e+00 : f32
    %37 = vector.broadcast %cst_17 : f32 to vector<8x128xf32>
    %38 = arith.addf %37, %36 : vector<8x128xf32>
    %39 = arith.divf %37, %38 : vector<8x128xf32>
    %40 = vector.extract_strided_slice %39 {offsets = [0, 0], sizes = [8, 32], strides = [1, 1]} : vector<8x128xf32> to vector<8x32xf32>
    %41 = vector.extract_strided_slice %39 {offsets = [0, 32], sizes = [8, 32], strides = [1, 1]} : vector<8x128xf32> to vector<8x32xf32>
    %42 = vector.extract_strided_slice %39 {offsets = [0, 64], sizes = [8, 32], strides = [1, 1]} : vector<8x128xf32> to vector<8x32xf32>
    %cst_18 = arith.constant 2.000000e+00 : f32
    %43 = vector.broadcast %cst_18 : f32 to vector<8x32xf32>
    %44 = arith.mulf %43, %42 : vector<8x32xf32>
    %cst_19 = arith.constant 1.000000e+00 : f32
    %45 = vector.broadcast %cst_19 : f32 to vector<8x32xf32>
    %46 = arith.subf %44, %45 : vector<8x32xf32>
    %47 = vector.extract_strided_slice %39 {offsets = [0, 96], sizes = [8, 32], strides = [1, 1]} : vector<8x128xf32> to vector<8x32xf32>
    %48 = arith.mulf %41, %28 : vector<8x32xf32>
    %49 = arith.mulf %40, %46 : vector<8x32xf32>
    %50 = arith.addf %48, %49 : vector<8x32xf32>
    %51 = math.tanh %50 : vector<8x32xf32>
    %52 = arith.mulf %47, %51 : vector<8x32xf32>
    %c8 = arith.constant 8 : index
    %c0_20 = arith.constant 0 : index
    %53 = vector.load %arg8[%c8, %c0_20] : memref<64x32xf32, #tpu.memory_space<vmem>>, vector<8x32xf32>
    tpu.vector_store %arg8[%c8, %c0_20], %52 {strides = array<i32>} : memref<64x32xf32, #tpu.memory_space<vmem>>, vector<8x32xf32>,
    %54 = vector.extract_strided_slice %6 {offsets = [16, 0], sizes = [8, 128], strides = [1, 1]} : vector<64x128xf32> to vector<8x128xf32>
    %cst_21 = arith.constant dense<0.000000e+00> : vector<8x128xf32>
    %55 = tpu.matmul %52, %7, %cst_21 {dimension_numbers = #tpu.dot_dimension_numbers<[1], [0], [0], [1], [0, 0, 1, 1], [], []>} : vector<8x32xf32>, vector<32x128xf32>, vector<8x128xf32> -> vector<8x128xf32>
    %56 = arith.addf %54, %55 : vector<8x128xf32>
    %57 = arith.negf %56 : vector<8x128xf32>
    %58 = math.exp %57 : vector<8x128xf32>
    %cst_22 = arith.constant 1.000000e+00 : f32
    %59 = vector.broadcast %cst_22 : f32 to vector<8x128xf32>
    %60 = arith.addf %59, %58 : vector<8x128xf32>
    %61 = arith.divf %59, %60 : vector<8x128xf32>
    %62 = vector.extract_strided_slice %61 {offsets = [0, 0], sizes = [8, 32], strides = [1, 1]} : vector<8x128xf32> to vector<8x32xf32>
    %63 = vector.extract_strided_slice %61 {offsets = [0, 32], sizes = [8, 32], strides = [1, 1]} : vector<8x128xf32> to vector<8x32xf32>
    %64 = vector.extract_strided_slice %61 {offsets = [0, 64], sizes = [8, 32], strides = [1, 1]} : vector<8x128xf32> to vector<8x32xf32>
    %cst_23 = arith.constant 2.000000e+00 : f32
    %65 = vector.broadcast %cst_23 : f32 to vector<8x32xf32>
    %66 = arith.mulf %65, %64 : vector<8x32xf32>
    %cst_24 = arith.constant 1.000000e+00 : f32
    %67 = vector.broadcast %cst_24 : f32 to vector<8x32xf32>
    %68 = arith.subf %66, %67 : vector<8x32xf32>
    %69 = vector.extract_strided_slice %61 {offsets = [0, 96], sizes = [8, 32], strides = [1, 1]} : vector<8x128xf32> to vector<8x32xf32>
    %70 = arith.mulf %63, %50 : vector<8x32xf32>
    %71 = arith.mulf %62, %68 : vector<8x32xf32>
    %72 = arith.addf %70, %71 : vector<8x32xf32>
    %73 = math.tanh %72 : vector<8x32xf32>
    %74 = arith.mulf %69, %73 : vector<8x32xf32>
    %c16 = arith.constant 16 : index
    %c0_25 = arith.constant 0 : index
    %75 = vector.load %arg8[%c16, %c0_25] : memref<64x32xf32, #tpu.memory_space<vmem>>, vector<8x32xf32>
    tpu.vector_store %arg8[%c16, %c0_25], %74 {strides = array<i32>} : memref<64x32xf32, #tpu.memory_space<vmem>>, vector<8x32xf32>,
    %76 = vector.extract_strided_slice %6 {offsets = [24, 0], sizes = [8, 128], strides = [1, 1]} : vector<64x128xf32> to vector<8x128xf32>
    %cst_26 = arith.constant dense<0.000000e+00> : vector<8x128xf32>
    %77 = tpu.matmul %74, %7, %cst_26 {dimension_numbers = #tpu.dot_dimension_numbers<[1], [0], [0], [1], [0, 0, 1, 1], [], []>} : vector<8x32xf32>, vector<32x128xf32>, vector<8x128xf32> -> vector<8x128xf32>
    %78 = arith.addf %76, %77 : vector<8x128xf32>
    %79 = arith.negf %78 : vector<8x128xf32>
    %80 = math.exp %79 : vector<8x128xf32>
    %cst_27 = arith.constant 1.000000e+00 : f32
    %81 = vector.broadcast %cst_27 : f32 to vector<8x128xf32>
    %82 = arith.addf %81, %80 : vector<8x128xf32>
    %83 = arith.divf %81, %82 : vector<8x128xf32>
    %84 = vector.extract_strided_slice %83 {offsets = [0, 0], sizes = [8, 32], strides = [1, 1]} : vector<8x128xf32> to vector<8x32xf32>
    %85 = vector.extract_strided_slice %83 {offsets = [0, 32], sizes = [8, 32], strides = [1, 1]} : vector<8x128xf32> to vector<8x32xf32>
    %86 = vector.extract_strided_slice %83 {offsets = [0, 64], sizes = [8, 32], strides = [1, 1]} : vector<8x128xf32> to vector<8x32xf32>
    %cst_28 = arith.constant 2.000000e+00 : f32
    %87 = vector.broadcast %cst_28 : f32 to vector<8x32xf32>
    %88 = arith.mulf %87, %86 : vector<8x32xf32>
    %cst_29 = arith.constant 1.000000e+00 : f32
    %89 = vector.broadcast %cst_29 : f32 to vector<8x32xf32>
    %90 = arith.subf %88, %89 : vector<8x32xf32>
    %91 = vector.extract_strided_slice %83 {offsets = [0, 96], sizes = [8, 32], strides = [1, 1]} : vector<8x128xf32> to vector<8x32xf32>
    %92 = arith.mulf %85, %72 : vector<8x32xf32>
    %93 = arith.mulf %84, %90 : vector<8x32xf32>
    %94 = arith.addf %92, %93 : vector<8x32xf32>
    %95 = math.tanh %94 : vector<8x32xf32>
    %96 = arith.mulf %91, %95 : vector<8x32xf32>
    %c24 = arith.constant 24 : index
    %c0_30 = arith.constant 0 : index
    %97 = vector.load %arg8[%c24, %c0_30] : memref<64x32xf32, #tpu.memory_space<vmem>>, vector<8x32xf32>
    tpu.vector_store %arg8[%c24, %c0_30], %96 {strides = array<i32>} : memref<64x32xf32, #tpu.memory_space<vmem>>, vector<8x32xf32>,
    %98 = vector.extract_strided_slice %6 {offsets = [32, 0], sizes = [8, 128], strides = [1, 1]} : vector<64x128xf32> to vector<8x128xf32>
    %cst_31 = arith.constant dense<0.000000e+00> : vector<8x128xf32>
    %99 = tpu.matmul %96, %7, %cst_31 {dimension_numbers = #tpu.dot_dimension_numbers<[1], [0], [0], [1], [0, 0, 1, 1], [], []>} : vector<8x32xf32>, vector<32x128xf32>, vector<8x128xf32> -> vector<8x128xf32>
    %100 = arith.addf %98, %99 : vector<8x128xf32>
    %101 = arith.negf %100 : vector<8x128xf32>
    %102 = math.exp %101 : vector<8x128xf32>
    %cst_32 = arith.constant 1.000000e+00 : f32
    %103 = vector.broadcast %cst_32 : f32 to vector<8x128xf32>
    %104 = arith.addf %103, %102 : vector<8x128xf32>
    %105 = arith.divf %103, %104 : vector<8x128xf32>
    %106 = vector.extract_strided_slice %105 {offsets = [0, 0], sizes = [8, 32], strides = [1, 1]} : vector<8x128xf32> to vector<8x32xf32>
    %107 = vector.extract_strided_slice %105 {offsets = [0, 32], sizes = [8, 32], strides = [1, 1]} : vector<8x128xf32> to vector<8x32xf32>
    %108 = vector.extract_strided_slice %105 {offsets = [0, 64], sizes = [8, 32], strides = [1, 1]} : vector<8x128xf32> to vector<8x32xf32>
    %cst_33 = arith.constant 2.000000e+00 : f32
    %109 = vector.broadcast %cst_33 : f32 to vector<8x32xf32>
    %110 = arith.mulf %109, %108 : vector<8x32xf32>
    %cst_34 = arith.constant 1.000000e+00 : f32
    %111 = vector.broadcast %cst_34 : f32 to vector<8x32xf32>
    %112 = arith.subf %110, %111 : vector<8x32xf32>
    %113 = vector.extract_strided_slice %105 {offsets = [0, 96], sizes = [8, 32], strides = [1, 1]} : vector<8x128xf32> to vector<8x32xf32>
    %114 = arith.mulf %107, %94 : vector<8x32xf32>
    %115 = arith.mulf %106, %112 : vector<8x32xf32>
    %116 = arith.addf %114, %115 : vector<8x32xf32>
    %117 = math.tanh %116 : vector<8x32xf32>
    %118 = arith.mulf %113, %117 : vector<8x32xf32>
    %c32 = arith.constant 32 : index
    %c0_35 = arith.constant 0 : index
    %119 = vector.load %arg8[%c32, %c0_35] : memref<64x32xf32, #tpu.memory_space<vmem>>, vector<8x32xf32>
    tpu.vector_store %arg8[%c32, %c0_35], %118 {strides = array<i32>} : memref<64x32xf32, #tpu.memory_space<vmem>>, vector<8x32xf32>,
    %120 = vector.extract_strided_slice %6 {offsets = [40, 0], sizes = [8, 128], strides = [1, 1]} : vector<64x128xf32> to vector<8x128xf32>
    %cst_36 = arith.constant dense<0.000000e+00> : vector<8x128xf32>
    %121 = tpu.matmul %118, %7, %cst_36 {dimension_numbers = #tpu.dot_dimension_numbers<[1], [0], [0], [1], [0, 0, 1, 1], [], []>} : vector<8x32xf32>, vector<32x128xf32>, vector<8x128xf32> -> vector<8x128xf32>
    %122 = arith.addf %120, %121 : vector<8x128xf32>
    %123 = arith.negf %122 : vector<8x128xf32>
    %124 = math.exp %123 : vector<8x128xf32>
    %cst_37 = arith.constant 1.000000e+00 : f32
    %125 = vector.broadcast %cst_37 : f32 to vector<8x128xf32>
    %126 = arith.addf %125, %124 : vector<8x128xf32>
    %127 = arith.divf %125, %126 : vector<8x128xf32>
    %128 = vector.extract_strided_slice %127 {offsets = [0, 0], sizes = [8, 32], strides = [1, 1]} : vector<8x128xf32> to vector<8x32xf32>
    %129 = vector.extract_strided_slice %127 {offsets = [0, 32], sizes = [8, 32], strides = [1, 1]} : vector<8x128xf32> to vector<8x32xf32>
    %130 = vector.extract_strided_slice %127 {offsets = [0, 64], sizes = [8, 32], strides = [1, 1]} : vector<8x128xf32> to vector<8x32xf32>
    %cst_38 = arith.constant 2.000000e+00 : f32
    %131 = vector.broadcast %cst_38 : f32 to vector<8x32xf32>
    %132 = arith.mulf %131, %130 : vector<8x32xf32>
    %cst_39 = arith.constant 1.000000e+00 : f32
    %133 = vector.broadcast %cst_39 : f32 to vector<8x32xf32>
    %134 = arith.subf %132, %133 : vector<8x32xf32>
    %135 = vector.extract_strided_slice %127 {offsets = [0, 96], sizes = [8, 32], strides = [1, 1]} : vector<8x128xf32> to vector<8x32xf32>
    %136 = arith.mulf %129, %116 : vector<8x32xf32>
    %137 = arith.mulf %128, %134 : vector<8x32xf32>
    %138 = arith.addf %136, %137 : vector<8x32xf32>
    %139 = math.tanh %138 : vector<8x32xf32>
    %140 = arith.mulf %135, %139 : vector<8x32xf32>
    %c40 = arith.constant 40 : index
    %c0_40 = arith.constant 0 : index
    %141 = vector.load %arg8[%c40, %c0_40] : memref<64x32xf32, #tpu.memory_space<vmem>>, vector<8x32xf32>
    tpu.vector_store %arg8[%c40, %c0_40], %140 {strides = array<i32>} : memref<64x32xf32, #tpu.memory_space<vmem>>, vector<8x32xf32>,
    %142 = vector.extract_strided_slice %6 {offsets = [48, 0], sizes = [8, 128], strides = [1, 1]} : vector<64x128xf32> to vector<8x128xf32>
    %cst_41 = arith.constant dense<0.000000e+00> : vector<8x128xf32>
    %143 = tpu.matmul %140, %7, %cst_41 {dimension_numbers = #tpu.dot_dimension_numbers<[1], [0], [0], [1], [0, 0, 1, 1], [], []>} : vector<8x32xf32>, vector<32x128xf32>, vector<8x128xf32> -> vector<8x128xf32>
    %144 = arith.addf %142, %143 : vector<8x128xf32>
    %145 = arith.negf %144 : vector<8x128xf32>
    %146 = math.exp %145 : vector<8x128xf32>
    %cst_42 = arith.constant 1.000000e+00 : f32
    %147 = vector.broadcast %cst_42 : f32 to vector<8x128xf32>
    %148 = arith.addf %147, %146 : vector<8x128xf32>
    %149 = arith.divf %147, %148 : vector<8x128xf32>
    %150 = vector.extract_strided_slice %149 {offsets = [0, 0], sizes = [8, 32], strides = [1, 1]} : vector<8x128xf32> to vector<8x32xf32>
    %151 = vector.extract_strided_slice %149 {offsets = [0, 32], sizes = [8, 32], strides = [1, 1]} : vector<8x128xf32> to vector<8x32xf32>
    %152 = vector.extract_strided_slice %149 {offsets = [0, 64], sizes = [8, 32], strides = [1, 1]} : vector<8x128xf32> to vector<8x32xf32>
    %cst_43 = arith.constant 2.000000e+00 : f32
    %153 = vector.broadcast %cst_43 : f32 to vector<8x32xf32>
    %154 = arith.mulf %153, %152 : vector<8x32xf32>
    %cst_44 = arith.constant 1.000000e+00 : f32
    %155 = vector.broadcast %cst_44 : f32 to vector<8x32xf32>
    %156 = arith.subf %154, %155 : vector<8x32xf32>
    %157 = vector.extract_strided_slice %149 {offsets = [0, 96], sizes = [8, 32], strides = [1, 1]} : vector<8x128xf32> to vector<8x32xf32>
    %158 = arith.mulf %151, %138 : vector<8x32xf32>
    %159 = arith.mulf %150, %156 : vector<8x32xf32>
    %160 = arith.addf %158, %159 : vector<8x32xf32>
    %161 = math.tanh %160 : vector<8x32xf32>
    %162 = arith.mulf %157, %161 : vector<8x32xf32>
    %c48 = arith.constant 48 : index
    %c0_45 = arith.constant 0 : index
    %163 = vector.load %arg8[%c48, %c0_45] : memref<64x32xf32, #tpu.memory_space<vmem>>, vector<8x32xf32>
    tpu.vector_store %arg8[%c48, %c0_45], %162 {strides = array<i32>} : memref<64x32xf32, #tpu.memory_space<vmem>>, vector<8x32xf32>,
    %164 = vector.extract_strided_slice %6 {offsets = [56, 0], sizes = [8, 128], strides = [1, 1]} : vector<64x128xf32> to vector<8x128xf32>
    %cst_46 = arith.constant dense<0.000000e+00> : vector<8x128xf32>
    %165 = tpu.matmul %162, %7, %cst_46 {dimension_numbers = #tpu.dot_dimension_numbers<[1], [0], [0], [1], [0, 0, 1, 1], [], []>} : vector<8x32xf32>, vector<32x128xf32>, vector<8x128xf32> -> vector<8x128xf32>
    %166 = arith.addf %164, %165 : vector<8x128xf32>
    %167 = arith.negf %166 : vector<8x128xf32>
    %168 = math.exp %167 : vector<8x128xf32>
    %cst_47 = arith.constant 1.000000e+00 : f32
    %169 = vector.broadcast %cst_47 : f32 to vector<8x128xf32>
    %170 = arith.addf %169, %168 : vector<8x128xf32>
    %171 = arith.divf %169, %170 : vector<8x128xf32>
    %172 = vector.extract_strided_slice %171 {offsets = [0, 0], sizes = [8, 32], strides = [1, 1]} : vector<8x128xf32> to vector<8x32xf32>
    %173 = vector.extract_strided_slice %171 {offsets = [0, 32], sizes = [8, 32], strides = [1, 1]} : vector<8x128xf32> to vector<8x32xf32>
    %174 = vector.extract_strided_slice %171 {offsets = [0, 64], sizes = [8, 32], strides = [1, 1]} : vector<8x128xf32> to vector<8x32xf32>
    %cst_48 = arith.constant 2.000000e+00 : f32
    %175 = vector.broadcast %cst_48 : f32 to vector<8x32xf32>
    %176 = arith.mulf %175, %174 : vector<8x32xf32>
    %cst_49 = arith.constant 1.000000e+00 : f32
    %177 = vector.broadcast %cst_49 : f32 to vector<8x32xf32>
    %178 = arith.subf %176, %177 : vector<8x32xf32>
    %179 = vector.extract_strided_slice %171 {offsets = [0, 96], sizes = [8, 32], strides = [1, 1]} : vector<8x128xf32> to vector<8x32xf32>
    %180 = arith.mulf %173, %160 : vector<8x32xf32>
    %181 = arith.mulf %172, %178 : vector<8x32xf32>
    %182 = arith.addf %180, %181 : vector<8x32xf32>
    %183 = math.tanh %182 : vector<8x32xf32>
    %184 = arith.mulf %179, %183 : vector<8x32xf32>
    %c56 = arith.constant 56 : index
    %c0_50 = arith.constant 0 : index
    %185 = vector.load %arg8[%c56, %c0_50] : memref<64x32xf32, #tpu.memory_space<vmem>>, vector<8x32xf32>
    tpu.vector_store %arg8[%c56, %c0_50], %184 {strides = array<i32>} : memref<64x32xf32, #tpu.memory_space<vmem>>, vector<8x32xf32>,
    %c0_51 = arith.constant 0 : index
    %c0_52 = arith.constant 0 : index
    %186 = vector.load %arg8[%c0_51, %c0_52] : memref<64x32xf32, #tpu.memory_space<vmem>>, vector<64x32xf32>
    %c0_53 = arith.constant 0 : index
    %c0_54 = arith.constant 0 : index
    %187 = vector.load %arg5[%c0_53, %c0_54] : memref<32x8xf32, #tpu.memory_space<vmem>>, vector<32x8xf32>
    %cst_55 = arith.constant dense<0.000000e+00> : vector<64x8xf32>
    %188 = tpu.matmul %186, %187, %cst_55 {dimension_numbers = #tpu.dot_dimension_numbers<[1], [0], [0], [1], [0, 0, 1, 1], [], []>} : vector<64x32xf32>, vector<32x8xf32>, vector<64x8xf32> -> vector<64x8xf32>
    %c0_56 = arith.constant 0 : index
    %c0_57 = arith.constant 0 : index
    %189 = vector.load %arg6[%c0_56, %c0_57] : memref<1x8xf32, #tpu.memory_space<vmem>>, vector<1x8xf32>
    %190 = vector.broadcast %189 : vector<1x8xf32> to vector<64x8xf32>
    %191 = arith.addf %188, %190 : vector<64x8xf32>
    %cst_58 = arith.constant dense<0xFF800000> : vector<64xf32>
    %192 = vector.multi_reduction <maximumf>, %191, %cst_58 [1] : vector<64x8xf32> to vector<64xf32>
    %193 = vector.shape_cast %192 : vector<64xf32> to vector<64x1xf32>
    %194 = vector.broadcast %193 : vector<64x1xf32> to vector<64x8xf32>
    %195 = arith.subf %191, %194 : vector<64x8xf32>
    %196 = math.exp %195 : vector<64x8xf32>
    %cst_59 = arith.constant dense<0.000000e+00> : vector<64xf32>
    %197 = vector.multi_reduction <add>, %196, %cst_59 [1] : vector<64x8xf32> to vector<64xf32>
    %198 = vector.shape_cast %197 : vector<64xf32> to vector<64x1xf32>
    %199 = math.log %198 : vector<64x1xf32>
    %200 = arith.addf %193, %199 : vector<64x1xf32>
    %201 = vector.broadcast %200 : vector<64x1xf32> to vector<64x8xf32>
    %202 = arith.subf %191, %201 : vector<64x8xf32>
    %c0_60 = arith.constant 0 : index
    %c0_61 = arith.constant 0 : index
    %c0_62 = arith.constant 0 : index
    %203 = vector.load %arg7[%c0_60, %c0_61, %c0_62] : memref<1x64x8xf32, #tpu.memory_space<vmem>>, vector<1x64x8xf32>
    %204 = vector.shape_cast %203 : vector<1x64x8xf32> to vector<64x8xf32>
    %205 = vector.shape_cast %202 : vector<64x8xf32> to vector<1x64x8xf32>
    tpu.vector_store %arg7[%c0_60, %c0_61, %c0_62], %205 {strides = array<i32>} : memref<1x64x8xf32, #tpu.memory_space<vmem>>, vector<1x64x8xf32>,
    return
  }
  func.func @transform_0(%arg0: i32) -> (i32, i32, i32) {
    %c0_i32 = arith.constant 0 : i32
    %c0_i32_0 = arith.constant 0 : i32
    %c0_i32_1 = arith.constant 0 : i32
    return %arg0, %c0_i32, %c0_i32_0 : i32, i32, i32
  }
  func.func @transform_1(%arg0: i32) -> (i32, i32) {
    %c0_i32 = arith.constant 0 : i32
    %c0_i32_0 = arith.constant 0 : i32
    %c0_i32_1 = arith.constant 0 : i32
    return %c0_i32, %c0_i32_0 : i32, i32
  }
  func.func @transform_2(%arg0: i32) -> (i32, i32) {
    %c0_i32 = arith.constant 0 : i32
    %c0_i32_0 = arith.constant 0 : i32
    %c0_i32_1 = arith.constant 0 : i32
    return %c0_i32, %c0_i32_0 : i32, i32
  }
  func.func @transform_3(%arg0: i32) -> (i32, i32) {
    %c0_i32 = arith.constant 0 : i32
    %c0_i32_0 = arith.constant 0 : i32
    %c0_i32_1 = arith.constant 0 : i32
    return %c0_i32, %c0_i32_0 : i32, i32
  }
  func.func @transform_4(%arg0: i32) -> (i32, i32) {
    %c0_i32 = arith.constant 0 : i32
    %c0_i32_0 = arith.constant 0 : i32
    %c0_i32_1 = arith.constant 0 : i32
    return %c0_i32, %c0_i32_0 : i32, i32
  }
  func.func @transform_5(%arg0: i32) -> (i32, i32) {
    %c0_i32 = arith.constant 0 : i32
    %c0_i32_0 = arith.constant 0 : i32
    %c0_i32_1 = arith.constant 0 : i32
    return %c0_i32, %c0_i32_0 : i32, i32
  }
  func.func @transform_6(%arg0: i32) -> (i32, i32, i32) {
    %c0_i32 = arith.constant 0 : i32
    %c0_i32_0 = arith.constant 0 : i32
    %c0_i32_1 = arith.constant 0 : i32
    return %arg0, %c0_i32, %c0_i32_0 : i32, i32, i32
  }
}

</mosaic_0001>

<bundles_post_ra>
// kernel: tpu_custom_call.1
= control target key start
LH: loop header
LB: loop body
LE: loop exit
PB: predicated region body
PF: predicated region fallthrough
CT: control target
= control target key end

     0   :  { %s1315_s21 = smov 0   ;;  %s1593_s0 = inlined_call_operand.vmem [shape: f32[2,64,32], index: 0, kind: input, shape index: {}]   ;;  %s1594_s1 = inlined_call_operand.vmem [shape: f32[32,128], index: 1, kind: input, shape index: {}]   ;;  %s1595_s2 = inlined_call_operand.vmem [shape: f32[32,128], index: 2, kind: input, shape index: {}]   ;;  %s1596_s3 = inlined_call_operand.vmem [shape: f32[1,128], index: 3, kind: input, shape index: {}]   ;;  %s1597_s4 = inlined_call_operand.vmem [shape: f32[32,8], index: 4, kind: input, shape index: {}]   ;;  %s1598_s5 = inlined_call_operand.vmem [shape: f32[1,8], index: 5, kind: input, shape index: {}]   ;;  %s1599_s6 = inlined_call_operand.vmem [shape: f32[2,64,8], index: 6, kind: output, shape index: {}]  }
   0x1 LB: > { %s1116_s22 = sadd.s32 4294967295, %s1275_s21   ;;  %p1120_p0 = scmp.ge.s32.totalorder %s1275_s21, 1  ;;  %s1275_s21 = sphi %s1315_s21, %s16_s21  }
   0x2   : > { %p212_p1 = scmp.lt.s32.totalorder %s1275_s21, 3 }
   0x4   : > { %p213_p2 = pnand %p1120_p0, %p212_p1 }
   0x5   : > { %p242_p3 = scmp.lt.s32.totalorder (!%p213_p2), %s1116_s22, 1  ;;  %s1278_s23 = smov (!%p213_p2), 64  }
   0x6   : > { %216 = sbr.rel (%p213_p2) target bundleno = 5296 (0x14b0), region = 44  ;;  %s1279_s24 = smov (!%p213_p2), 32  }
   0xb   : > { %v263_v0 = vld [vmem:[%s1594_s1 + $0x18] sm:$0xff]  ;;  %v262_v1 = vld [vmem:[%s1594_s1 + $0x10] sm:$0xff]  ;;  %v261_v3 = vld [vmem:[%s1594_s1 + $0x8] sm:$0xff]  ;;  %s1601_s22 = smov (!%p242_p3, %s1116_s22), 1  ;;  %vm268_vm0 = vcmask 261120   ;;  %v1277_v11 = vmov 0.0  }
   0xc   : > { %1168 = vmatpush.msra.mxu2 %v263_v0  ;;  %v1332_v2 = vld [vmem:[%s1595_s2 + $0x18] sm:$0xff]  ;;  %305 = vmatpush.msra.mxu0 %v263_v0  ;;  %v1344_v4 = vld [vmem:[%s1595_s2 + $0x10] sm:$0xff]  ;;  %v260_v5 = vld [vmem:[%s1594_s1] sm:$0xff]  ;;  %s1166_s11 = sshll.u32 %s1601_s22, 6 }
   0xd   : > { %485 = vmatpush.msra.mxu3 %v1332_v2  ;;  %551 = vmatpush.msra.mxu1 %v1332_v2  ;;  %s1357_s14 = scalar_lea.vmem %s1593_s0, %s1166_s11  ;;  %v1362_v6 = vld [vmem:[%s1595_s2 + $0x8] sm:$0xff]  ;;  %v1372_v9 = vld [vmem:[%s1595_s2] sm:$0xff] }
   0xe   : > { %1169 = vmatpush.msra.mxu2 %v262_v1  ;;  %306 = vmatpush.msra.mxu0 %v262_v1  ;;  %v258_v7 = vld [vmem:[%s1357_s14 + $0x30] sm:$0xff]  ;;  %v252_v8 = vld [vmem:[%s1357_s14] sm:$0xff]  ;;  %v259_v10 = vld [vmem:[%s1357_s14 + $0x38] sm:$0xff] }
   0xf   : > { %486 = vmatpush.msra.mxu3 %v1344_v4  ;;  %552 = vmatpush.msra.mxu1 %v1344_v4  ;;  %v1406_v15 = vld [vmem:[%s1596_s3] ss:$0 sm:$0xff]  ;;  %v253_v42 = vld [vmem:[%s1357_s14 + $0x8] sm:$0xff] }
  0x10   : > { %1170 = vmatpush.msra.mxu2 %v261_v3  ;;  %307 = vmatpush.msra.mxu0 %v261_v3 }
  0x11   : > { %487 = vmatpush.msra.mxu3 %v1362_v6  ;;  %553 = vmatpush.msra.mxu1 %v1362_v6 }
  0x12   : > { %1171 = vmatpush.msra.mxu2 %v260_v5  ;;  %308 = vmatpush.msra.mxu0 %v260_v5 }
  0x13   : > { %1131 = vmatmul.msk.f32.vlgmr.msra.gmra.mxu2 %vm268_vm0, %v258_v7  ;;  %1125 = vmatmul.msk.f32.vlgmr.msra.gmra.mxu0 %vm268_vm0, %v252_v8  ;;  %v254_v7 = vld [vmem:[%s1357_s14 + $0x10] sm:$0xff] }
  0x14   : > { %353 = vmatpush.msrb.mxu2 %v1332_v2  ;;  %488 = vmatpush.msra.mxu3 %v1372_v9 }
  0x15   : > { %554 = vmatpush.msra.mxu1 %v1372_v9 }
  0x16   : > { %683 = vmatpush.msrb.mxu3 %v1332_v2  ;;  %354 = vmatpush.msrb.mxu2 %v1344_v4 }
  0x17   : > { %749 = vmatpush.msrb.mxu1 %v1332_v2 }
  0x18   : > { %684 = vmatpush.msrb.mxu3 %v1344_v4  ;;  %355 = vmatpush.msrb.mxu2 %v1362_v6 }
  0x19   : > { %750 = vmatpush.msrb.mxu1 %v1344_v4 }
  0x1a   : > { %685 = vmatpush.msrb.mxu3 %v1362_v6  ;;  %356 = vmatpush.msrb.mxu2 %v1372_v9 }
  0x1b   : > { %751 = vmatpush.msrb.mxu1 %v1362_v6  ;;  %1132 = vmatmul.msk.f32.gmra.mxu2 %vm268_vm0, %v259_v10 }
  0x1c   : > { %686 = vmatpush.msrb.mxu3 %v1372_v9  ;;  %419 = vmatpush.msra.mxu2 %v1332_v2 }
  0x1d   : > { %752 = vmatpush.msrb.mxu1 %v1372_v9  ;;  %1126 = vmatmul.msk.f32.gmra.mxu0 %vm268_vm0, %v253_v42 }
  0x1e   : > { %420 = vmatpush.msra.mxu2 %v1344_v4 }
  0x20   : > { %421 = vmatpush.msra.mxu2 %v1362_v6 }
  0x22   : > { %422 = vmatpush.msra.mxu2 %v1372_v9 }
  0x23   : > { %357 = vmatmul.f32.vlgmr.msrb.gmra.mxu2 %v1277_v11 }
  0x24   : > { %617 = vmatpush.msrb.mxu2 %v1332_v2 }
  0x25   : > { %1127 = vmatmul.msk.f32.gmra.mxu0 %vm268_vm0, %v254_v7 }
  0x26   : > { %618 = vmatpush.msrb.mxu2 %v1344_v4 }
  0x28   : > { %619 = vmatpush.msrb.mxu2 %v1362_v6 }
  0x2a   : > { %620 = vmatpush.msrb.mxu2 %v1372_v9 }
  0x90   : > { %v310_v14 = vpop.f32.mrf.mxu0 }
  0x91   : > { %v311_v16 = vadd.f32 %v1406_v15, %v310_v14 }
  0x96   : > { %v1399_v12 = vpop.f32.mrf.mxu2 }
  0x9a   : > { %v313_v44 = vpop.f32.mrf.mxu0 }
  0x9b   : > { %v314_v45 = vadd.f32 %v1406_v15, %v313_v44 }
  0x9e   : > { %v1401_v13 = vpop.f32.mrf.mxu2 }
  0xa6   : > { %v358_v17 = vpop.f32.mrf.mxu2 }
  0xa7   : > { %v361_v18 = vadd.f32 %v358_v17, %v311_v16 }
  0xa9   : > { %v1133_v19 = vmul.f32 -1.442695, %v361_v18 }
  0xab   : > { %1189 = vpow2.f32 %v1133_v19 }
  0xb1   : > { %v1190_v20 = vpop.eup %1189 }
  0xb2   : > { %v365_v21 = vadd.f32 1.0, %v1190_v20 }
  0xb4   : > { %1191 = vrcp.f32 %v365_v21  ;;  %v377_v25 = vand.u32 2147483648, %v365_v21  ;;  %v375_v27 = vand.u32 2147483647, %v365_v21  ;;  %vm371_vm2 = vweird.f32 %v365_v21 }
  0xb6   : > { %v378_v29 = vor.u32 1.1754944e-38, %v377_v25  ;;  %vm376_vm4 = vcmp.eq.f32.partialorder %v375_v27, 8.507059e+37 }
  0xba   : > { %v1192_v22 = vpop.eup %1191 }
  0xbb   : > { %v367_v23 = vmul.f32 %v1192_v22, %v365_v21  ;;  %vm372_vm1 = vweird.f32 %v1192_v22 }
  0xbc   : > { %vm373_vm3 = vmor %vm371_vm2, %vm372_vm1 }
  0xbd   : > { %v368_v24 = vsub.f32 1.0, %v367_v23 }
  0xbf   : > { %v369_v26 = vmul.f32 %v1192_v22, %v368_v24 }
  0xc1   : > { %v370_v28 = vadd.f32 %v1192_v22, %v369_v26 }
  0xc3   : > { %v374_v30 = vsel %vm373_vm3, %v1192_v22, %v370_v28 }
  0xc4   : > { %v379_v31 = vsel %vm376_vm4, %v378_v29, %v374_v30 }
  0xc5   : > { %v381_v32 = vmul.f32 2.0, %v379_v31  ;;  %v383_v36 = vmul.f32 0.0, %v379_v31 }
  0xc7   : > { %v1134_v33 = vadd.f32 -1.0, %v381_v32 }
  0xc9   : > { %385 = vrot.lane.b32.xlu0 %v1134_v33, %s1278_s23 }
 0x13b   : > { %v386_v34 = vpop.permute.xlu0 %385 }
 0x13c   : > { %v388_v35 = vmul.f32 %v386_v34, %v379_v31 }
 0x13e   : > { %390 = vrot.lane.b32.xlu0 %v388_v35, %s1279_s24 }
 0x1b0   : > { %v391_v37 = vpop.permute.xlu0 %390 }
 0x1b1   : > { %v393_v38 = vadd.f32 %v391_v37, %v383_v36  ;;  %v255_v37 = vld [vmem:[%s1357_s14 + $0x18] sm:$0xff] }
 0x1b2   : > { %1128 = vmatmul.msk.f32.gmra.mxu0 %vm268_vm0, %v255_v37  ;;  %v877_v37 = vld [vmem:[%s1597_s4 + $0x10] sm:$0xff] }
 0x1b3   : > { %1193 = vtanh.f32 %v393_v38 }
 0x1b9   : > { %v1194_v39 = vpop.eup %1193 }
 0x1ba   : > { %396 = vrot.lane.b32.xlu1 %v1194_v39, %s1278_s23 }
 0x22c   : > { %v397_v40 = vpop.permute.xlu1 %396 }
 0x22d   : > { %v399_v41 = vmul.f32 %v397_v40, %v379_v31 }
 0x22f   : > { %401 = vrot.lane.b32.xlu1 %v399_v41, %s1279_s24 }
 0x2a1   : > { %v402_v43 = vpop.permute.xlu1 %401 }
 0x2a2   : > { %404 = vst.msk [vmem:[#allocation2] sm:$0xff] %vm268_vm0, %v402_v43  ;;  %1135 = vmatmul.msk.f32.vlgmr.msra.gmra.mxu2 %vm268_vm0, %v402_v43 }
 0x2a3   : > { %815 = vmatpush.msra.mxu2 %v1332_v2 }
 0x2a5   : > { %816 = vmatpush.msra.mxu2 %v1344_v4 }
 0x2a7   : > { %817 = vmatpush.msra.mxu2 %v1362_v6 }
 0x2a9   : > { %818 = vmatpush.msra.mxu2 %v1372_v9  ;;  %v316_v9 = vpop.f32.mrf.mxu0 }
 0x2aa   : > { %v317_v10 = vadd.f32 %v1406_v15, %v316_v9 }
 0x2b1   : > { %v319_v41 = vpop.f32.mrf.mxu0 }
 0x2b2   : > { %v320_v42 = vadd.f32 %v1406_v15, %v319_v41 }
 0x325   : > { %v424_v46 = vpop.f32.mrf.mxu2 }
 0x326   : > { %v427_v47 = vadd.f32 %v424_v46, %v314_v45 }
 0x328   : > { %v1136_v48 = vmul.f32 -1.442695, %v427_v47 }
 0x32a   : > { %1195 = vpow2.f32 %v1136_v48 }
 0x330   : > { %v1196_v49 = vpop.eup %1195 }
 0x331   : > { %v431_v50 = vadd.f32 1.0, %v1196_v49 }
 0x333   : > { %1197 = vrcp.f32 %v431_v50  ;;  %v443_v54 = vand.u32 2147483648, %v431_v50  ;;  %v441_v56 = vand.u32 2147483647, %v431_v50  ;;  %vm437_vm6 = vweird.f32 %v431_v50 }
 0x335   : > { %v444_v58 = vor.u32 1.1754944e-38, %v443_v54  ;;  %vm442_vm8 = vcmp.eq.f32.partialorder %v441_v56, 8.507059e+37 }
 0x339   : > { %v1198_v51 = vpop.eup %1197 }
 0x33a   : > { %v433_v52 = vmul.f32 %v1198_v51, %v431_v50  ;;  %vm438_vm5 = vweird.f32 %v1198_v51 }
 0x33b   : > { %vm439_vm7 = vmor %vm437_vm6, %vm438_vm5 }
 0x33c   : > { %v434_v53 = vsub.f32 1.0, %v433_v52 }
 0x33e   : > { %v435_v55 = vmul.f32 %v1198_v51, %v434_v53 }
 0x340   : > { %v436_v57 = vadd.f32 %v1198_v51, %v435_v55 }
 0x342   : > { %v440_v59 = vsel %vm439_vm7, %v1198_v51, %v436_v57 }
 0x343   : > { %v445_v60 = vsel %vm442_vm8, %v444_v58, %v440_v59 }
 0x344   : > { %v447_v61 = vmul.f32 2.0, %v445_v60  ;;  %v449_v1 = vmul.f32 %v445_v60, %v393_v38 }
 0x346   : > { %v1137_v62 = vadd.f32 -1.0, %v447_v61 }
 0x348   : > { %451 = vrot.lane.b32.xlu2 %v1137_v62, %s1278_s23 }
 0x3a2   : > { %v452_v63 = vpop.permute.xlu2 %451 }
 0x3a3   : > { %v454_v0 = vmul.f32 %v452_v63, %v445_v60 }
 0x3a5   : > { %456 = vrot.lane.b32.xlu2 %v454_v0, %s1279_s24 }
 0x3ff   : > { %v457_v2 = vpop.permute.xlu2 %456 }
 0x400   : > { %v459_v3 = vadd.f32 %v457_v2, %v449_v1 }
 0x402   : > { %1199 = vtanh.f32 %v459_v3 }
 0x408   : > { %v1200_v4 = vpop.eup %1199 }
 0x409   : > { %462 = vrot.lane.b32.xlu0 %v1200_v4, %s1278_s23  ;;  %v256_v4 = vld [vmem:[%s1357_s14 + $0x20] sm:$0xff] }
 0x40a   : > { %1129 = vmatmul.msk.f32.gmra.mxu0 %vm268_vm0, %v256_v4 }
 0x47b   : > { %v463_v5 = vpop.permute.xlu0 %462 }
 0x47c   : > { %v465_v6 = vmul.f32 %v463_v5, %v445_v60 }
 0x47e   : > { %467 = vrot.lane.b32.xlu1 %v465_v6, %s1279_s24 }
 0x487   : > { %v322_v6 = vpop.f32.mrf.mxu0 }
 0x488   : > { %v323_v7 = vadd.f32 %v1406_v15, %v322_v6 }
 0x4f0   : > { %v468_v8 = vpop.permute.xlu1 %467 }
 0x4f1   : > { %470 = vst.msk [vmem:[#allocation2 + $0x8] sm:$0xff] %vm268_vm0, %v468_v8  ;;  %1138 = vmatmul.msk.f32.vlgmr.msra.gmra.mxu3 %vm268_vm0, %v468_v8 }
 0x574   : > { %v490_v11 = vpop.f32.mrf.mxu3 }
 0x575   : > { %v493_v14 = vadd.f32 %v490_v11, %v317_v10 }
 0x577   : > { %v1139_v16 = vmul.f32 -1.442695, %v493_v14 }
 0x579   : > { %1201 = vpow2.f32 %v1139_v16 }
 0x57f   : > { %v1202_v17 = vpop.eup %1201 }
 0x580   : > { %v497_v18 = vadd.f32 1.0, %v1202_v17 }
 0x582   : > { %1203 = vrcp.f32 %v497_v18  ;;  %v509_v22 = vand.u32 2147483648, %v497_v18  ;;  %v507_v24 = vand.u32 2147483647, %v497_v18  ;;  %vm503_vm10 = vweird.f32 %v497_v18 }
 0x584   : > { %v510_v26 = vor.u32 1.1754944e-38, %v509_v22  ;;  %vm508_vm12 = vcmp.eq.f32.partialorder %v507_v24, 8.507059e+37 }
 0x588   : > { %v1204_v19 = vpop.eup %1203 }
 0x589   : > { %v499_v20 = vmul.f32 %v1204_v19, %v497_v18  ;;  %vm504_vm9 = vweird.f32 %v1204_v19 }
 0x58a   : > { %vm505_vm11 = vmor %vm503_vm10, %vm504_vm9 }
 0x58b   : > { %v500_v21 = vsub.f32 1.0, %v499_v20 }
 0x58d   : > { %v501_v23 = vmul.f32 %v1204_v19, %v500_v21 }
 0x58f   : > { %v502_v25 = vadd.f32 %v1204_v19, %v501_v23 }
 0x591   : > { %v506_v27 = vsel %vm505_vm11, %v1204_v19, %v502_v25 }
 0x592   : > { %v511_v28 = vsel %vm508_vm12, %v510_v26, %v506_v27 }
 0x593   : > { %v513_v29 = vmul.f32 2.0, %v511_v28  ;;  %v515_v33 = vmul.f32 %v511_v28, %v459_v3 }
 0x595   : > { %v1140_v30 = vadd.f32 -1.0, %v513_v29 }
 0x597   : > { %517 = vrot.lane.b32.xlu2 %v1140_v30, %s1278_s23 }
 0x5f1   : > { %v518_v31 = vpop.permute.xlu2 %517 }
 0x5f2   : > { %v520_v32 = vmul.f32 %v518_v31, %v511_v28 }
 0x5f4   : > { %522 = vrot.lane.b32.xlu0 %v520_v32, %s1279_s24 }
 0x666   : > { %v523_v34 = vpop.permute.xlu0 %522 }
 0x667   : > { %v525_v35 = vadd.f32 %v523_v34, %v515_v33 }
 0x669   : > { %1205 = vtanh.f32 %v525_v35 }
 0x66f   : > { %v1206_v36 = vpop.eup %1205 }
 0x670   : > { %528 = vrot.lane.b32.xlu1 %v1206_v36, %s1278_s23  ;;  %v878_v36 = vld [vmem:[%s1597_s4 + $0x18] sm:$0xff] }
 0x671   : > { %1172 = vmatpush.msra.mxu3 %v878_v36 }
 0x673   : > { %1173 = vmatpush.msra.mxu3 %v877_v37 }
 0x6e2   : > { %v529_v38 = vpop.permute.xlu1 %528 }
 0x6e3   : > { %v531_v39 = vmul.f32 %v529_v38, %v511_v28  ;;  %v257_v38 = vld [vmem:[%s1357_s14 + $0x28] sm:$0xff]  ;;  %s1552_s14 = scalar_lea.vmem %s1599_s6, %s1166_s11 }
 0x6e4   : > { %1130 = vmatmul.msk.f32.gmra.mxu0 %vm268_vm0, %v257_v38 }
 0x6e5   : > { %533 = vrot.lane.b32.xlu2 %v531_v39, %s1279_s24  ;;  %v876_v39 = vld [vmem:[%s1597_s4 + $0x8] sm:$0xff] }
 0x6e6   : > { %1174 = vmatpush.msra.mxu3 %v876_v39 }
 0x73f   : > { %v534_v40 = vpop.permute.xlu2 %533 }
 0x740   : > { %536 = vst.msk [vmem:[#allocation2 + $0x10] sm:$0xff] %vm268_vm0, %v534_v40  ;;  %1141 = vmatmul.msk.f32.vlgmr.msra.gmra.mxu1 %vm268_vm0, %v534_v40  ;;  %v875_v40 = vld [vmem:[%s1597_s4] sm:$0xff] }
 0x741   : > { %919 = vmatpush.msra.mxu1 %v878_v36  ;;  %1175 = vmatpush.msra.mxu3 %v875_v40 }
 0x743   : > { %920 = vmatpush.msra.mxu1 %v877_v37 }
 0x745   : > { %921 = vmatpush.msra.mxu1 %v876_v39 }
 0x747   : > { %922 = vmatpush.msra.mxu1 %v875_v40 }
 0x7bd   : > { %v556_v43 = vpop.f32.mrf.mxu1 }
 0x7be   : > { %v559_v44 = vadd.f32 %v556_v43, %v320_v42  ;;  %v325_v43 = vpop.f32.mrf.mxu0 }
 0x7c0   : > { %v1142_v45 = vmul.f32 -1.442695, %v559_v44  ;;  %v326_v44 = vadd.f32 %v1406_v15, %v325_v43 }
 0x7c2   : > { %1207 = vpow2.f32 %v1142_v45 }
 0x7c8   : > { %v1208_v46 = vpop.eup %1207 }
 0x7c9   : > { %v563_v47 = vadd.f32 1.0, %v1208_v46 }
 0x7cb   : > { %1209 = vrcp.f32 %v563_v47  ;;  %v575_v51 = vand.u32 2147483648, %v563_v47  ;;  %v573_v53 = vand.u32 2147483647, %v563_v47  ;;  %vm569_vm14 = vweird.f32 %v563_v47 }
 0x7cd   : > { %v576_v55 = vor.u32 1.1754944e-38, %v575_v51  ;;  %vm574_vm1 = vcmp.eq.f32.partialorder %v573_v53, 8.507059e+37 }
 0x7d1   : > { %v1210_v48 = vpop.eup %1209 }
 0x7d2   : > { %v565_v49 = vmul.f32 %v1210_v48, %v563_v47  ;;  %vm570_vm13 = vweird.f32 %v1210_v48 }
 0x7d3   : > { %vm571_vm15 = vmor %vm569_vm14, %vm570_vm13 }
 0x7d4   : > { %v566_v50 = vsub.f32 1.0, %v565_v49 }
 0x7d6   : > { %v567_v52 = vmul.f32 %v1210_v48, %v566_v50 }
 0x7d8   : > { %v568_v54 = vadd.f32 %v1210_v48, %v567_v52 }
 0x7da   : > { %v572_v56 = vsel %vm571_vm15, %v1210_v48, %v568_v54 }
 0x7db   : > { %v577_v57 = vsel %vm574_vm1, %v576_v55, %v572_v56 }
 0x7dc   : > { %v579_v58 = vmul.f32 2.0, %v577_v57  ;;  %v581_v62 = vmul.f32 %v577_v57, %v525_v35 }
 0x7de   : > { %v1143_v59 = vadd.f32 -1.0, %v579_v58 }
 0x7e0   : > { %583 = vrot.lane.b32.xlu0 %v1143_v59, %s1278_s23 }
 0x852   : > { %v584_v60 = vpop.permute.xlu0 %583 }
 0x853   : > { %v586_v61 = vmul.f32 %v584_v60, %v577_v57 }
 0x855   : > { %588 = vrot.lane.b32.xlu1 %v586_v61, %s1279_s24 }
 0x8c7   : > { %v589_v63 = vpop.permute.xlu1 %588 }
 0x8c8   : > { %v591_v0 = vadd.f32 %v589_v63, %v581_v62 }
 0x8ca   : > { %1211 = vtanh.f32 %v591_v0 }
 0x8d0   : > { %v1212_v1 = vpop.eup %1211 }
 0x8d1   : > { %594 = vrot.lane.b32.xlu2 %v1212_v1, %s1278_s23 }
 0x92b   : > { %v595_v2 = vpop.permute.xlu2 %594 }
 0x92c   : > { %v597_v3 = vmul.f32 %v595_v2, %v577_v57 }
 0x92e   : > { %599 = vrot.lane.b32.xlu0 %v597_v3, %s1279_s24 }
 0x9a0   : > { %v600_v5 = vpop.permute.xlu0 %599 }
 0x9a1   : > { %602 = vst.msk [vmem:[#allocation2 + $0x18] sm:$0xff] %vm268_vm0, %v600_v5  ;;  %1144 = vmatmul.msk.f32.vlgmr.msrb.gmra.mxu2 %vm268_vm0, %v600_v5 }
 0xa24   : > { %v622_v8 = vpop.f32.mrf.mxu2 }
 0xa25   : > { %v625_v9 = vadd.f32 %v622_v8, %v323_v7  ;;  %v867_v7 = vld [vmem:[#allocation2] sm:$0xff] }
 0xa27   : > { %v1145_v10 = vmul.f32 -1.442695, %v625_v9  ;;  %v868_v9 = vld [vmem:[#allocation2 + $0x8] sm:$0xff] }
 0xa29   : > { %1213 = vpow2.f32 %v1145_v10  ;;  %v869_v10 = vld [vmem:[#allocation2 + $0x10] sm:$0xff] }
 0xa2f   : > { %v1214_v11 = vpop.eup %1213 }
 0xa30   : > { %v629_v14 = vadd.f32 1.0, %v1214_v11  ;;  %v870_v11 = vld [vmem:[#allocation2 + $0x18] sm:$0xff] }
 0xa32   : > { %1215 = vrcp.f32 %v629_v14  ;;  %v641_v19 = vand.u32 2147483648, %v629_v14  ;;  %v639_v21 = vand.u32 2147483647, %v629_v14  ;;  %vm635_vm3 = vweird.f32 %v629_v14 }
 0xa34   : > { %v642_v23 = vor.u32 1.1754944e-38, %v641_v19  ;;  %vm640_vm5 = vcmp.eq.f32.partialorder %v639_v21, 8.507059e+37 }
 0xa38   : > { %v1216_v16 = vpop.eup %1215 }
 0xa39   : > { %v631_v17 = vmul.f32 %v1216_v16, %v629_v14  ;;  %vm636_vm2 = vweird.f32 %v1216_v16  ;;  %v329_v14 = vadd.f32 %v1406_v15, %v1399_v12 }
 0xa3a   : > { %vm637_vm4 = vmor %vm635_vm3, %vm636_vm2  ;;  %vm948_vm3 = vcmask 64512  }
 0xa3b   : > { %v632_v18 = vsub.f32 1.0, %v631_v17 }
 0xa3d   : > { %v633_v20 = vmul.f32 %v1216_v16, %v632_v18 }
 0xa3f   : > { %v634_v22 = vadd.f32 %v1216_v16, %v633_v20 }
 0xa41   : > { %v638_v24 = vsel %vm637_vm4, %v1216_v16, %v634_v22 }
 0xa42   : > { %v643_v25 = vsel %vm640_vm5, %v642_v23, %v638_v24 }
 0xa43   : > { %v645_v26 = vmul.f32 2.0, %v643_v25  ;;  %v647_v30 = vmul.f32 %v643_v25, %v591_v0 }
 0xa45   : > { %v1146_v27 = vadd.f32 -1.0, %v645_v26 }
 0xa47   : > { %649 = vrot.lane.b32.xlu1 %v1146_v27, %s1278_s23 }
 0xab9   : > { %v650_v28 = vpop.permute.xlu1 %649 }
 0xaba   : > { %v652_v29 = vmul.f32 %v650_v28, %v643_v25 }
 0xabc   : > { %654 = vrot.lane.b32.xlu2 %v652_v29, %s1279_s24 }
 0xb16   : > { %v655_v31 = vpop.permute.xlu2 %654 }
 0xb17   : > { %v657_v32 = vadd.f32 %v655_v31, %v647_v30 }
 0xb19   : > { %1217 = vtanh.f32 %v657_v32 }
 0xb1f   : > { %v1218_v33 = vpop.eup %1217 }
 0xb20   : > { %660 = vrot.lane.b32.xlu0 %v1218_v33, %s1278_s23 }
 0xb92   : > { %v661_v34 = vpop.permute.xlu0 %660 }
 0xb93   : > { %v663_v35 = vmul.f32 %v661_v34, %v643_v25 }
 0xb95   : > { %665 = vrot.lane.b32.xlu1 %v663_v35, %s1279_s24 }
 0xc07   : > { %v666_v41 = vpop.permute.xlu1 %665 }
 0xc08   : > { %668 = vst.msk [vmem:[#allocation2 + $0x20] sm:$0xff] %vm268_vm0, %v666_v41  ;;  %1147 = vmatmul.msk.f32.vlgmr.msrb.gmra.mxu3 %vm268_vm0, %v666_v41 }
 0xc0f   : > { %v871_v42 = vld [vmem:[#allocation2 + $0x20] sm:$0xff] }
 0xc10   : > { %1160 = vmatmul.msk.f32.vlgmr.msra.gmra.mxu3 %vm268_vm0, %v871_v42  ;;  %v332_v42 = vadd.f32 %v1406_v15, %v1401_v13 }
 0xc8b   : > { %v688_v45 = vpop.f32.mrf.mxu3 }
 0xc8c   : > { %v691_v46 = vadd.f32 %v688_v45, %v326_v44 }
 0xc8e   : > { %v1148_v47 = vmul.f32 -1.442695, %v691_v46 }
 0xc90   : > { %1219 = vpow2.f32 %v1148_v47 }
 0xc96   : > { %v1220_v48 = vpop.eup %1219 }
 0xc97   : > { %v695_v49 = vadd.f32 1.0, %v1220_v48 }
 0xc99   : > { %1221 = vrcp.f32 %v695_v49  ;;  %v707_v53 = vand.u32 2147483648, %v695_v49  ;;  %v705_v55 = vand.u32 2147483647, %v695_v49  ;;  %vm701_vm7 = vweird.f32 %v695_v49 }
 0xc9b   : > { %v708_v57 = vor.u32 1.1754944e-38, %v707_v53  ;;  %vm706_vm9 = vcmp.eq.f32.partialorder %v705_v55, 8.507059e+37 }
 0xc9f   : > { %v1222_v50 = vpop.eup %1221 }
 0xca0   : > { %v697_v51 = vmul.f32 %v1222_v50, %v695_v49  ;;  %vm702_vm6 = vweird.f32 %v1222_v50 }
 0xca1   : > { %vm703_vm8 = vmor %vm701_vm7, %vm702_vm6 }
 0xca2   : > { %v698_v52 = vsub.f32 1.0, %v697_v51 }
 0xca4   : > { %v699_v54 = vmul.f32 %v1222_v50, %v698_v52 }
 0xca6   : > { %v700_v56 = vadd.f32 %v1222_v50, %v699_v54 }
 0xca8   : > { %v704_v58 = vsel %vm703_vm8, %v1222_v50, %v700_v56 }
 0xca9   : > { %v709_v59 = vsel %vm706_vm9, %v708_v57, %v704_v58 }
 0xcaa   : > { %v711_v60 = vmul.f32 2.0, %v709_v59  ;;  %v713_v0 = vmul.f32 %v709_v59, %v657_v32 }
 0xcac   : > { %v1149_v61 = vadd.f32 -1.0, %v711_v60 }
 0xcae   : > { %715 = vrot.lane.b32.xlu2 %v1149_v61, %s1278_s23 }
 0xd08   : > { %v716_v62 = vpop.permute.xlu2 %715 }
 0xd09   : > { %v718_v63 = vmul.f32 %v716_v62, %v709_v59 }
 0xd0b   : > { %720 = vrot.lane.b32.xlu0 %v718_v63, %s1279_s24  ;;  %v1498_v63 = vld [vmem:[%s1598_s5] ss:$0 sm:$0xff] }
 0xd7d   : > { %v721_v1 = vpop.permute.xlu0 %720 }
 0xd7e   : > { %v723_v2 = vadd.f32 %v721_v1, %v713_v0 }
 0xd80   : > { %1223 = vtanh.f32 %v723_v2 }
 0xd86   : > { %v1224_v3 = vpop.eup %1223 }
 0xd87   : > { %726 = vrot.lane.b32.xlu1 %v1224_v3, %s1278_s23 }
 0xdf9   : > { %v727_v4 = vpop.permute.xlu1 %726 }
 0xdfa   : > { %v729_v5 = vmul.f32 %v727_v4, %v709_v59 }
 0xdfc   : > { %731 = vrot.lane.b32.xlu2 %v729_v5, %s1279_s24  ;;  %v936_v5 = vpop.f32.mrf.mxu3 }
 0xe56   : > { %v732_v6 = vpop.permute.xlu2 %731 }
 0xe57   : > { %734 = vst.msk [vmem:[#allocation2 + $0x28] sm:$0xff] %vm268_vm0, %v732_v6  ;;  %1150 = vmatmul.msk.f32.vlgmr.msrb.gmra.mxu1 %vm268_vm0, %v732_v6  ;;  %v1511_v6 = vadd.f32 %v1498_v63, %v936_v5 }
 0xe5e   : > { %v872_v8 = vld [vmem:[#allocation2 + $0x28] sm:$0xff] }
 0xe5f   : > { %1156 = vmatmul.msk.f32.vlgmr.msra.gmra.mxu1 %vm268_vm0, %v867_v7  ;;  %1161 = vmatmul.msk.f32.gmra.mxu3 %vm268_vm0, %v872_v8  ;;  %v961_v7 = vsel %vm948_vm3, %v1511_v6, -inf }
 0xe67   : > { %1157 = vmatmul.msk.f32.gmra.mxu1 %vm268_vm0, %v868_v9 }
 0xe6f   : > { %1158 = vmatmul.msk.f32.gmra.mxu1 %vm268_vm0, %v869_v10 }
 0xe77   : > { %1159 = vmatmul.msk.f32.gmra.mxu1 %vm268_vm0, %v870_v11 }
 0xed4   : > { %v754_v16 = vpop.f32.mrf.mxu1 }
 0xed5   : > { %v757_v17 = vadd.f32 %v754_v16, %v329_v14 }
 0xed7   : > { %v1151_v18 = vmul.f32 -1.442695, %v757_v17 }
 0xed9   : > { %1225 = vpow2.f32 %v1151_v18 }
 0xedc   : > { %v924_v60 = vpop.f32.mrf.mxu1 }
 0xedd   : > { %v1501_v0 = vadd.f32 %v1498_v63, %v924_v60 }
 0xedf   : > { %v1226_v19 = vpop.eup %1225  ;;  %v949_v1 = vsel %vm948_vm3, %v1501_v0, -inf }
 0xee0   : > { %v761_v20 = vadd.f32 1.0, %v1226_v19 }
 0xee2   : > { %1227 = vrcp.f32 %v761_v20  ;;  %v773_v24 = vand.u32 2147483648, %v761_v20  ;;  %v771_v26 = vand.u32 2147483647, %v761_v20  ;;  %vm767_vm11 = vweird.f32 %v761_v20  ;;  %v939_v17 = vpop.f32.mrf.mxu3 }
 0xee3   : > { %v1522_v18 = vadd.f32 %v1498_v63, %v939_v17 }
 0xee4   : > { %v774_v28 = vor.u32 1.1754944e-38, %v773_v24  ;;  %vm772_vm13 = vcmp.eq.f32.partialorder %v771_v26, 8.507059e+37  ;;  %v927_v61 = vpop.f32.mrf.mxu1 }
 0xee5   : > { %v1517_v14 = vadd.f32 %v1498_v63, %v927_v61  ;;  %v964_v19 = vsel %vm948_vm3, %v1522_v18, -inf }
 0xee7   : > { %v952_v16 = vsel %vm948_vm3, %v1517_v14, -inf }
 0xee8   : > { %v1228_v21 = vpop.eup %1227 }
 0xee9   : > { %v763_v22 = vmul.f32 %v1228_v21, %v761_v20  ;;  %vm768_vm10 = vweird.f32 %v1228_v21 }
 0xeea   : > { %vm769_vm12 = vmor %vm767_vm11, %vm768_vm10 }
 0xeeb   : > { %v764_v23 = vsub.f32 1.0, %v763_v22 }
 0xeec   : > { %v930_v62 = vpop.f32.mrf.mxu1 }
 0xeed   : > { %v765_v25 = vmul.f32 %v1228_v21, %v764_v23 }
 0xeef   : > { %v766_v27 = vadd.f32 %v1228_v21, %v765_v25 }
 0xef1   : > { %v770_v29 = vsel %vm769_vm12, %v1228_v21, %v766_v27 }
 0xef2   : > { %v775_v12 = vsel %vm772_vm13, %v774_v28, %v770_v29 }
 0xef3   : > { %v777_v30 = vmul.f32 2.0, %v775_v12  ;;  %v779_v34 = vmul.f32 %v775_v12, %v723_v2 }
 0xef4   : > { %v933_v2 = vpop.f32.mrf.mxu1 }
 0xef5   : > { %v1152_v31 = vadd.f32 -1.0, %v777_v30  ;;  %v1506_v3 = vadd.f32 %v1498_v63, %v933_v2 }
 0xef7   : > { %781 = vrot.lane.b32.xlu0 %v1152_v31, %s1278_s23  ;;  %v958_v4 = vsel %vm948_vm3, %v1506_v3, -inf  ;;  %v1532_v31 = vadd.f32 %v1498_v63, %v930_v62 }
 0xf69   : > { %v782_v32 = vpop.permute.xlu0 %781 }
 0xf6a   : > { %v784_v33 = vmul.f32 %v782_v32, %v775_v12 }
 0xf6c   : > { %786 = vrot.lane.b32.xlu1 %v784_v33, %s1279_s24 }
 0xfde   : > { %v787_v35 = vpop.permute.xlu1 %786 }
 0xfdf   : > { %v789_v36 = vadd.f32 %v787_v35, %v779_v34  ;;  %v955_v34 = vsel %vm948_vm3, %v1532_v31, -inf }
 0xfe1   : > { %1229 = vtanh.f32 %v789_v36 }
 0xfe7   : > { %v1230_v37 = vpop.eup %1229 }
 0xfe8   : > { %792 = vrot.lane.b32.xlu2 %v1230_v37, %s1278_s23 }
0x1042   : > { %v793_v38 = vpop.permute.xlu2 %792 }
0x1043   : > { %v795_v39 = vmul.f32 %v793_v38, %v775_v12 }
0x1045   : > { %797 = vrot.lane.b32.xlu0 %v795_v39, %s1279_s24 }
0x10b7   : > { %v798_v40 = vpop.permute.xlu0 %797 }
0x10b8   : > { %800 = vst.msk [vmem:[#allocation2 + $0x30] sm:$0xff] %vm268_vm0, %v798_v40  ;;  %1153 = vmatmul.msk.f32.vlgmr.msra.gmra.mxu2 %vm268_vm0, %v798_v40 }
0x10bf   : > { %v873_v41 = vld [vmem:[#allocation2 + $0x30] sm:$0xff] }
0x10c0   : > { %1162 = vmatmul.msk.f32.gmra.mxu3 %vm268_vm0, %v873_v41 }
0x113b   : > { %v820_v43 = vpop.f32.mrf.mxu2 }
0x113c   : > { %v823_v44 = vadd.f32 %v820_v43, %v332_v42 }
0x113e   : > { %v1154_v45 = vmul.f32 -1.442695, %v823_v44 }
0x1140   : > { %1231 = vpow2.f32 %v1154_v45 }
0x1143   : > { %v942_v35 = vpop.f32.mrf.mxu3 }
0x1144   : > { %v1538_v37 = vadd.f32 %v1498_v63, %v942_v35 }
0x1146   : > { %v1232_v46 = vpop.eup %1231  ;;  %v967_v40 = vsel %vm948_vm3, %v1538_v37, -inf }
0x1147   : > { %v827_v47 = vadd.f32 1.0, %v1232_v46 }
0x1149   : > { %1233 = vrcp.f32 %v827_v47  ;;  %v839_v51 = vand.u32 2147483648, %v827_v47  ;;  %v837_v53 = vand.u32 2147483647, %v827_v47  ;;  %vm833_vm15 = vweird.f32 %v827_v47 }
0x114b   : > { %v840_v55 = vor.u32 1.1754944e-38, %v839_v51  ;;  %vm838_vm2 = vcmp.eq.f32.partialorder %v837_v53, 8.507059e+37 }
0x114f   : > { %v1234_v48 = vpop.eup %1233 }
0x1150   : > { %v829_v49 = vmul.f32 %v1234_v48, %v827_v47  ;;  %vm834_vm14 = vweird.f32 %v1234_v48 }
0x1151   : > { %vm835_vm1 = vmor %vm833_vm15, %vm834_vm14 }
0x1152   : > { %v830_v50 = vsub.f32 1.0, %v829_v49 }
0x1154   : > { %v831_v52 = vmul.f32 %v1234_v48, %v830_v50 }
0x1156   : > { %v832_v54 = vadd.f32 %v1234_v48, %v831_v52 }
0x1158   : > { %v836_v56 = vsel %vm835_vm1, %v1234_v48, %v832_v54 }
0x1159   : > { %v841_v13 = vsel %vm838_vm2, %v840_v55, %v836_v56 }
0x115a   : > { %v843_v15 = vmul.f32 2.0, %v841_v13  ;;  %v845_v8 = vmul.f32 %v841_v13, %v789_v36 }
0x115c   : > { %v1155_v57 = vadd.f32 -1.0, %v843_v15 }
0x115e   : > { %847 = vrot.lane.b32.xlu1 %v1155_v57, %s1278_s23 }
0x11d0   : > { %v848_v58 = vpop.permute.xlu1 %847 }
0x11d1   : > { %v850_v59 = vmul.f32 %v848_v58, %v841_v13 }
0x11d3   : > { %852 = vrot.lane.b32.xlu2 %v850_v59, %s1279_s24 }
0x11fc   : > { %950 = vmax.xlane.f32.xlu2 %v949_v1 }
0x1204   : > { %959 = vmax.xlane.f32.xlu2 %v958_v4 }
0x120c   : > { %962 = vmax.xlane.f32.xlu2 %v961_v7 }
0x122d   : > { %v853_v9 = vpop.permute.xlu2 %852 }
0x122e   : > { %v855_v10 = vadd.f32 %v853_v9, %v845_v8 }
0x1230   : > { %1235 = vtanh.f32 %v855_v10 }
0x1236   : > { %v1236_v11 = vpop.eup %1235 }
0x1237   : > { %858 = vrot.lane.b32.xlu0 %v1236_v11, %s1278_s23 }
0x1261   : > { %953 = vmax.xlane.f32.xlu0 %v952_v16 }
0x1269   : > { %965 = vmax.xlane.f32.xlu0 %v964_v19 }
0x126f   : > { %v951_v20 = vpop.xlane.xlu2 %950 }
0x1270   : > { %v973_v21 = vsub.f32 %v1501_v0, %v951_v20 }
0x1272   : > { %v981_v22 = vmul.f32 1.442695, %v973_v21 }
0x1274   : > { %1237 = vpow2.f32 %v981_v22 }
0x1277   : > { %v960_v23 = vpop.xlane.xlu2 %959 }
0x1278   : > { %v976_v24 = vsub.f32 %v1506_v3, %v960_v23 }
0x127a   : > { %v1238_v25 = vpop.eup %1237  ;;  %v987_v26 = vmul.f32 1.442695, %v976_v24 }
0x127b   : > { %v997_v27 = vsel %vm948_vm3, %v1238_v25, 0.0 }
0x127c   : > { %1239 = vpow2.f32 %v987_v26  ;;  %998 = vadd.xlane.f32.xlu0 %v997_v27 }
0x127f   : > { %v963_v38 = vpop.xlane.xlu2 %962 }
0x1280   : > { %v977_v39 = vsub.f32 %v1511_v6, %v963_v38 }
0x1282   : > { %v1240_v28 = vpop.eup %1239  ;;  %v989_v41 = vmul.f32 1.442695, %v977_v39 }
0x1283   : > { %v1006_v29 = vsel %vm948_vm3, %v1240_v28, 0.0 }
0x1284   : > { %1007 = vadd.xlane.f32.xlu0 %v1006_v29 }
0x12a9   : > { %v859_v12 = vpop.permute.xlu0 %858 }
0x12aa   : > { %v861_v30 = vmul.f32 %v859_v12, %v841_v13 }
0x12ac   : > { %863 = vrot.lane.b32.xlu1 %v861_v30, %s1279_s24 }
0x12d4   : > { %v954_v32 = vpop.xlane.xlu0 %953 }
0x12d5   : > { %v974_v33 = vsub.f32 %v1517_v14, %v954_v32 }
0x12d6   : > { %956 = vmax.xlane.f32.xlu1 %v955_v34 }
0x12d7   : > { %v983_v36 = vmul.f32 1.442695, %v974_v33 }
0x12d9   : > { %1241 = vpow2.f32 %v983_v36 }
0x12da   : > { %1243 = vpow2.f32 %v989_v41 }
0x12dc   : > { %v1544_v44 = vpop.xlane.xlu0 %965 }
0x12de   : > { %968 = vmax.xlane.f32.xlu1 %v967_v40 }
0x12df   : > { %v1242_v42 = vpop.eup %1241 }
0x12e0   : > { %v1000_v43 = vsel %vm948_vm3, %v1242_v42, 0.0  ;;  %v1244_v45 = vpop.eup %1243 }
0x12e1   : > { %v1009_v46 = vsel %vm948_vm3, %v1244_v45, 0.0 }
0x12e6   : > { %1001 = vadd.xlane.f32.xlu1 %v1000_v43 }
0x12ee   : > { %1010 = vadd.xlane.f32.xlu1 %v1009_v46 }
0x12ef   : > { %v999_v47 = vpop.xlane.xlu0 %998 }
0x12f0   : > { %1245 = vlog2.f32 %v999_v47 }
0x12f6   : > { %v1246_v48 = vpop.eup %1245 }
0x12f7   : > { %v1022_v49 = vmul.f32 0.6931472, %v1246_v48  ;;  %v1008_v50 = vpop.xlane.xlu0 %1007 }
0x12f8   : > { %1247 = vlog2.f32 %v1008_v50 }
0x12f9   : > { %v1037_v51 = vadd.f32 %v1022_v49, %v951_v20  ;;  %v978_v20 = vsub.f32 %v1522_v18, %v1544_v44 }
0x12fb   : > { %v1045_v52 = vsub.f32 %v1501_v0, %v1037_v51  ;;  %v991_v21 = vmul.f32 1.442695, %v978_v20 }
0x12fd   : > { %1053 = vst.msk [vmem:[%s1552_s14] sm:$0xff] %vm948_vm3, %v1045_v52 }
0x12fe   : > { %v1248_v53 = vpop.eup %1247 }
0x12ff   : > { %v1028_v54 = vmul.f32 0.6931472, %v1248_v53 }
0x1301   : > { %v1040_v55 = vadd.f32 %v1028_v54, %v960_v23 }
0x1303   : > { %v1048_v56 = vsub.f32 %v1506_v3, %v1040_v55 }
0x1305   : > { %1056 = vst.msk [vmem:[%s1552_s14 + $0x18] sm:$0xff] %vm948_vm3, %v1048_v56 }
0x131e   : > { %v864_v13 = vpop.permute.xlu1 %863 }
0x131f   : > { %866 = vst.msk [vmem:[#allocation2 + $0x38] sm:$0xff] %vm268_vm0, %v864_v13 }
0x1326   : > { %v874_v15 = vld [vmem:[#allocation2 + $0x38] sm:$0xff] }
0x1327   : > { %1163 = vmatmul.msk.f32.gmra.mxu3 %vm268_vm0, %v874_v15 }
0x1349   : > { %v957_v57 = vpop.xlane.xlu1 %956 }
0x134a   : > { %v975_v11 = vsub.f32 %v1532_v31, %v957_v57 }
0x134c   : > { %v985_v16 = vmul.f32 1.442695, %v975_v11 }
0x1351   : > { %v969_v58 = vpop.xlane.xlu1 %968 }
0x1352   : > { %v979_v59 = vsub.f32 %v1538_v37, %v969_v58 }
0x1354   : > { %v993_v60 = vmul.f32 1.442695, %v979_v59 }
0x1356   : > { %1249 = vpow2.f32 %v993_v60 }
0x1359   : > { %v1002_v61 = vpop.xlane.xlu1 %1001 }
0x135a   : > { %1251 = vlog2.f32 %v1002_v61 }
0x135c   : > { %v1250_v62 = vpop.eup %1249 }
0x135d   : > { %v1015_v0 = vsel %vm948_vm3, %v1250_v62, 0.0 }
0x135e   : > { %1016 = vadd.xlane.f32.xlu0 %v1015_v0 }
0x1360   : > { %v1252_v1 = vpop.eup %1251 }
0x1361   : > { %v1024_v2 = vmul.f32 0.6931472, %v1252_v1  ;;  %v1011_v3 = vpop.xlane.xlu1 %1010 }
0x1362   : > { %1253 = vlog2.f32 %v1011_v3 }
0x1363   : > { %v1038_v4 = vadd.f32 %v1024_v2, %v954_v32  ;;  %1255 = vpow2.f32 %v985_v16 }
0x1364   : > { %1257 = vpow2.f32 %v991_v21 }
0x1365   : > { %v1046_v5 = vsub.f32 %v1517_v14, %v1038_v4 }
0x1367   : > { %1054 = vst.msk [vmem:[%s1552_s14 + $0x8] sm:$0xff] %vm948_vm3, %v1046_v5 }
0x1368   : > { %v1254_v7 = vpop.eup %1253 }
0x1369   : > { %v1030_v8 = vmul.f32 0.6931472, %v1254_v7  ;;  %v1256_v22 = vpop.eup %1255 }
0x136a   : > { %v1258_v23 = vpop.eup %1257 }
0x136b   : > { %v1041_v9 = vadd.f32 %v1030_v8, %v963_v38  ;;  %v1012_v24 = vsel %vm948_vm3, %v1258_v23, 0.0 }
0x136d   : > { %v1049_v10 = vsub.f32 %v1511_v6, %v1041_v9  ;;  %v1003_v6 = vsel %vm948_vm3, %v1256_v22, 0.0 }
0x136f   : > { %1057 = vst.msk [vmem:[%s1552_s14 + $0x20] sm:$0xff] %vm948_vm3, %v1049_v10 }
0x13aa   : > { %v945_v17 = vpop.f32.mrf.mxu3 }
0x13ab   : > { %v946_v19 = vadd.f32 %v1498_v63, %v945_v17 }
0x13ad   : > { %v970_v14 = vsel %vm948_vm3, %v946_v19, -inf }
0x13ae   : > { %971 = vmax.xlane.f32.xlu2 %v970_v14 }
0x13b6   : > { %1004 = vadd.xlane.f32.xlu2 %v1003_v6 }
0x13be   : > { %1013 = vadd.xlane.f32.xlu2 %v1012_v24 }
0x13d1   : > { %v1017_v25 = vpop.xlane.xlu0 %1016 }
0x13d2   : > { %1259 = vlog2.f32 %v1017_v25 }
0x13d8   : > { %v1260_v63 = vpop.eup %1259 }
0x13d9   : > { %v1034_v26 = vmul.f32 0.6931472, %v1260_v63 }
0x13db   : > { %v1043_v27 = vadd.f32 %v1034_v26, %v969_v58 }
0x13dd   : > { %v1051_v28 = vsub.f32 %v1538_v37, %v1043_v27 }
0x13df   : > { %1059 = vst.msk [vmem:[%s1552_s14 + $0x30] sm:$0xff] %vm948_vm3, %v1051_v28 }
0x1421   : > { %v972_v29 = vpop.xlane.xlu2 %971 }
0x1422   : > { %v980_v12 = vsub.f32 %v946_v19, %v972_v29 }
0x1424   : > { %v995_v30 = vmul.f32 1.442695, %v980_v12 }
0x1426   : > { %1261 = vpow2.f32 %v995_v30 }
0x1429   : > { %v1005_v32 = vpop.xlane.xlu2 %1004 }
0x142a   : > { %1263 = vlog2.f32 %v1005_v32 }
0x142c   : > { %v1262_v33 = vpop.eup %1261 }
0x142d   : > { %v1018_v34 = vsel %vm948_vm3, %v1262_v33, 0.0 }
0x142e   : > { %1019 = vadd.xlane.f32.xlu1 %v1018_v34 }
0x1430   : > { %v1264_v35 = vpop.eup %1263 }
0x1431   : > { %v1026_v36 = vmul.f32 0.6931472, %v1264_v35  ;;  %v1014_v38 = vpop.xlane.xlu2 %1013 }
0x1432   : > { %1265 = vlog2.f32 %v1014_v38 }
0x1433   : > { %v1039_v37 = vadd.f32 %v1026_v36, %v957_v57 }
0x1435   : > { %v1047_v39 = vsub.f32 %v1532_v31, %v1039_v37 }
0x1437   : > { %1055 = vst.msk [vmem:[%s1552_s14 + $0x10] sm:$0xff] %vm948_vm3, %v1047_v39 }
0x1438   : > { %v1266_v40 = vpop.eup %1265 }
0x1439   : > { %v1032_v41 = vmul.f32 0.6931472, %v1266_v40 }
0x143b   : > { %v1042_v42 = vadd.f32 %v1032_v41, %v1544_v44 }
0x143d   : > { %v1050_v43 = vsub.f32 %v1522_v18, %v1042_v42 }
0x143f   : > { %1058 = vst.msk [vmem:[%s1552_s14 + $0x28] sm:$0xff] %vm948_vm3, %v1050_v43 }
0x14a1   : > { %v1020_v45 = vpop.xlane.xlu1 %1019 }
0x14a2   : > { %1267 = vlog2.f32 %v1020_v45 }
0x14a8   : > { %v1268_v46 = vpop.eup %1267 }
0x14a9   : > { %v1036_v47 = vmul.f32 0.6931472, %v1268_v46 }
0x14ab   : > { %v1044_v48 = vadd.f32 %v1036_v47, %v972_v29 }
0x14ad   : > { %v1052_v49 = vsub.f32 %v946_v19, %v1044_v48 }
0x14af   : > { %1060 = vst.msk [vmem:[%s1552_s14 + $0x38] sm:$0xff] %vm948_vm3, %v1052_v49 }
0x14b0 PF: > { %s16_s21 = sadd.s32 1, %s1275_s21  }
0x14b1   : > { %p13_p4 = scmp.ge.s32.totalorder %s16_s21, 4  }
0x14b3   :  { %15 = sbr.rel (!%p13_p4) target bundleno = 1 (0x1), region = 74 }

</bundles_post_ra>
